<compile_context>
chip_gen: v7x
topology: tpu7x:2x2x1
jax: 0.10.0
libtpu: 0.0.40
codegen_flags: <defaults>
</compile_context>

<pallas_src>
import jax
import jax.numpy as jnp
from jax.experimental import pallas as pl
from jax.experimental.pallas import tpu as pltpu


def _flatten_copy_kernel(x_ref, o_ref):
    # Pure tile copy on an already-flattened, lane-dense 2-D block.
    o_ref[...] = x_ref[...]


def _round_down(x, m):
    return (x // m) * m


def _round_up(x, m):
    return ((x + m - 1) // m) * m


def _pick_tiles(n, flat, itemsize, max_block_bytes):
    """Choose (tn, tf) row/lane tile sizes under a per-block byte budget."""
    packing = max(1, 4 // itemsize)      # sublane pack factor (1 f32 / 2 bf16 / 4 int8)
    row_unit = 8 * packing               # minimal legal non-full-extent row tile
    budget_elems = max(1, max_block_bytes // itemsize)

    min_tn = row_unit if n >= row_unit else n   # full-extent n is always legal

    # ---- tiny lane axis: full extent is the only sensible (and legal) tile.
    if flat < 128:
        tf = flat
        if n < row_unit:
            tn = n
        else:
            tn = _round_down(min(n, max(row_unit, budget_elems // flat)), row_unit)
            tn = max(tn, row_unit)
        return tn, tf

    if min_tn * flat <= budget_elems:
        # ---- full-width blocks: tile only the row axis (one contiguous DMA
        # per block, 1-D grid).
        tf = flat
        if n <= min_tn:
            tn = n
        else:
            tn = _round_down(min(n, budget_elems // flat), row_unit)
            tn = max(tn, row_unit)
            # Prefer a row tile that divides n (avoids a masked partial last
            # block) without shrinking the tile by more than 2x.
            if n % tn != 0:
                cand = tn
                lo = max(row_unit, tn // 2)
                while cand >= lo:
                    if n % cand == 0:
                        tn = cand
                        break
                    cand -= row_unit
    else:
        # ---- must split the lane axis: minimal row tile, widest 128-multiple
        # lane tile that fits the budget.
        tn = min_tn
        tf_cap = max(128, _round_down(budget_elems // max(1, tn), 128))
        tf_cap = min(tf_cap, _round_up(flat, 128))
        if flat % 128 == 0:
            # Largest multiple-of-128 divisor of flat that fits -> every store
            # is an unmasked full-width vst.
            tf = 128
            cand = _round_down(min(tf_cap, flat), 128)
            while cand >= 128:
                if flat % cand == 0:
                    tf = cand
                    break
                cand -= 128
        else:
            tf = max(128, _round_down(min(tf_cap, flat), 128))

    # ---- v7x: keep >= 2 row blocks when possible so ("parallel", ...) can
    # shard the copy across both TensorCores (negligible cost on v5e/v6e).
    if tf == flat and n >= 2 * row_unit:
        half = _round_up(pl.cdiv(n, 2), row_unit)
        if half < n:
            tn = min(tn, half)

    return tn, tf


def flatten(x, *, use_kernel=True, alias_input=False,
            max_block_bytes=4 * 1024 * 1024,
            vmem_limit_bytes=40 * 1024 * 1024):
    """Pallas equivalent of torch `Flatten`: (N, ...) -> (N, prod(...)).

    use_kernel=False returns the metadata-only XLA reshape (fastest possible:
    no HBM traffic, fuses into the consumer).  alias_input=True adds
    input_output_aliases={0: 0}; combine with buffer donation of `x` upstream
    to flatten in place.
    """
    n = x.shape[0]
    flat = 1
    for d in x.shape[1:]:
        flat *= d

    # Wrapper-level flatten: the kernel only ever sees a lane-dense 2-D slab.
    x2 = x.reshape(n, flat)

    if not use_kernel:
        # TODO(synk): in a real model this metadata-only path should be the
        # one used; the Pallas copy below exists because a kernel was asked for.
        return x2

    itemsize = jnp.dtype(x.dtype).itemsize
    tn, tf = _pick_tiles(n, flat, itemsize, max_block_bytes)

    common = dict(
        out_shape=jax.ShapeDtypeStruct((n, flat), x.dtype),
        compiler_params=pltpu.CompilerParams(
            dimension_semantics=(("parallel",) if tf == flat
                                 else ("parallel", "parallel")),
            vmem_limit_bytes=vmem_limit_bytes),
        cost_estimate=pl.CostEstimate(
            flops=0, transcendentals=0,
            bytes_accessed=2 * n * flat * itemsize),
        input_output_aliases=({0: 0} if alias_input else {}),
    )

    if tf == flat:
        # 1-D grid over rows: each block is one contiguous HBM region.
        call = pl.pallas_call(
            _flatten_copy_kernel,
            grid=(pl.cdiv(n, tn),),
            in_specs=[pl.BlockSpec((tn, flat), lambda i: (i, 0))],
            out_specs=pl.BlockSpec((tn, flat), lambda i: (i, 0)),
            **common)
    else:
        call = pl.pallas_call(
            _flatten_copy_kernel,
            grid=(pl.cdiv(n, tn), pl.cdiv(flat, tf)),
            in_specs=[pl.BlockSpec((tn, tf), lambda i, j: (i, j))],
            out_specs=pl.BlockSpec((tn, tf), lambda i, j: (i, j)),
            **common)

    return call(x2)


if __name__ == "__main__":
    key = jax.random.PRNGKey(0)
    # NCHW feature map, small shapes consistent with a conv backbone.
    x = jax.random.normal(key, (2, 4, 16, 16), dtype=jnp.float32)

    y = jax.block_until_ready(flatten(x))
    ref = x.reshape(x.shape[0], -1)
    assert y.shape == (2, 4 * 16 * 16), y.shape
    assert y.dtype == x.dtype
    assert jnp.array_equal(y, ref), "flatten kernel mismatch"

    # Odd-shaped case exercising the guarded non-128-multiple path.
    x_odd = jax.random.normal(jax.random.PRNGKey(1), (3, 5, 7, 9), dtype=jnp.float32)
    y_odd = jax.block_until_ready(flatten(x_odd))
    assert jnp.array_equal(y_odd, x_odd.reshape(3, -1)), "odd-shape flatten mismatch"

    # Metadata-only fast path agrees too.
    y_fast = jax.block_until_ready(flatten(x, use_kernel=False))
    assert jnp.array_equal(y_fast, ref)

    print("KERNEL_OK")
</pallas_src>

<mosaic_0001>
module attributes {stable_mosaic.version = 11 : i64} {
  func.func @_flatten_copy_kernel(%arg0: i32, %arg1: memref<2x1024xf32, #tpu.memory_space<vmem>>, %arg2: memref<2x1024xf32, #tpu.memory_space<vmem>>) attributes {dimension_semantics = [#tpu.dimension_semantics<parallel>], iteration_bounds = array<i64: 1>, scalar_prefetch = 0 : i64, scratch_operands = 0 : i64, tpu.core_type = #tpu.core_type<tc>, window_params = [{transform_indices = @transform_0, window_bounds = array<i64: 2, 1024>}, {transform_indices = @transform_1, window_bounds = array<i64: 2, 1024>}]} {
    %c0 = arith.constant 0 : index
    %c0_0 = arith.constant 0 : index
    %0 = vector.load %arg1[%c0, %c0_0] : memref<2x1024xf32, #tpu.memory_space<vmem>>, vector<2x1024xf32>
    %c0_1 = arith.constant 0 : index
    %c0_2 = arith.constant 0 : index
    %1 = vector.load %arg2[%c0_1, %c0_2] : memref<2x1024xf32, #tpu.memory_space<vmem>>, vector<2x1024xf32>
    tpu.vector_store %arg2[%c0_1, %c0_2], %0 {strides = array<i32>} : memref<2x1024xf32, #tpu.memory_space<vmem>>, vector<2x1024xf32>,
    return
  }
  func.func @transform_0(%arg0: i32) -> (i32, i32) {
    %c0_i32 = arith.constant 0 : i32
    %c0_i32_0 = arith.constant 0 : i32
    return %arg0, %c0_i32 : i32, i32
  }
  func.func @transform_1(%arg0: i32) -> (i32, i32) {
    %c0_i32 = arith.constant 0 : i32
    %c0_i32_0 = arith.constant 0 : i32
    return %arg0, %c0_i32 : i32, i32
  }
}

</mosaic_0001>

<bundles_post_ra>
// kernel: tpu_custom_call.1
= control target key start
LH: loop header
LB: loop body
LE: loop exit
PB: predicated region body
PF: predicated region fallthrough
CT: control target
= control target key end

     0   :  { %6 = vsyncpa [#allocation3], 0  ;;  %s126_s0 = inlined_call_operand.hbm [shape: f32[2,1024], index: 0, kind: input, shape index: {}]   ;;  %s127_s1 = inlined_call_operand.hbm [shape: f32[2,1024], index: 1, kind: output, shape index: {}]  }
   0x1   :  { %7 = vsyncpa [#allocation4], 0  ;;  %s90_s6 = smov [#allocation2]   ;;  %s42_s10 = scalar_lea.hbm %s126_s0, 256 }
   0x2   :  { %s14_s7 = sshll.u32 %s90_s6, 4  ;;  %p43_p0 = scmp.ne.s32.totalorder %s126_s0, %s42_s10  ;;  %s15_s7 = int_to_ptr.vmem [resolvable:$true] %s14_s7 }
   0x3   :  { %p46_p1 = scmp.lt.u32.totalorder %s42_s10, %s126_s0 }
   0x5   :  { %p48_p2 = pnand %p46_p1, %p43_p0 }
   0x7   :  { %51 = shalt.err (!%p48_p2)
}
   0x8   :  { %s52_s15 = scalar_lea.vmem %s15_s7, 256  ;;  %p57_p4 = scmp.lt.s32.totalorder %s15_s7, %s15_s7 }
   0x9   :  { %p53_p3 = scmp.ne.s32.totalorder %s15_s7, %s52_s15  ;;  %p58_p5 = scmp.lt.s32.totalorder %s52_s15, %s52_s15 }
   0xb   :  { %p59_p6 = por %p58_p5, %p57_p4 }
   0xd   :  { %p60_p7 = pnand %p59_p6, %p53_p3 }
   0xf   :  { %63 = shalt.err (!%p60_p7)
}
  0x10   :  { %17 = dma.hbm_to_vmem [thread:$0]  %s126_s0, 256, %s15_s7, [#allocation3]  }
  0x11   :  { %86 = dma.done.wait [#allocation3], 256  }
  0x12   :  { %87 = vsyncadd [#allocation3], 4294967040  ;;  %s91_s18 = smov [#allocation5]   ;;  %v21_v0 = vld [vmem:[#allocation2] sm:$0xff]  ;;  %v22_v1 = vld [vmem:[#allocation2 + $0x8] sm:$0xff] }
  0x13   :  { %s31_s19 = sshll.u32 %s91_s18, 4  ;;  %23 = vst [vmem:[#allocation5] sm:$0xff] %v21_v0  ;;  %24 = vst [vmem:[#allocation5 + $0x8] sm:$0xff] %v22_v1  ;;  %s32_s19 = int_to_ptr.vmem [resolvable:$true] %s31_s19 }
  0x14   :  { %s64_s20 = scalar_lea.vmem %s32_s19, 256  ;;  %p69_p9 = scmp.lt.s32.totalorder %s32_s19, %s32_s19 }
  0x15   :  { %p65_p8 = scmp.ne.s32.totalorder %s32_s19, %s64_s20  ;;  %p70_p10 = scmp.lt.s32.totalorder %s64_s20, %s64_s20 }
  0x17   :  { %p71_p11 = por %p70_p10, %p69_p9 }
  0x19   :  { %p72_p12 = pnand %p71_p11, %p65_p8 }
  0x1b   :  { %75 = shalt.err (!%p72_p12)
}
  0x1c   :  { %s76_s0 = scalar_lea.hbm %s127_s1, 256 }
  0x1d   :  { %p77_p13 = scmp.ne.s32.totalorder %s127_s1, %s76_s0  ;;  %p80_p0 = scmp.lt.u32.totalorder %s76_s0, %s127_s1 }
  0x1f   :  { %p82_p1 = pnand %p80_p0, %p77_p13 }
  0x21   :  { %85 = shalt.err (!%p82_p1)
}
  0x22   :  { %34 = dma.vmem_to_hbm [thread:$0]  %s32_s19, 256, %s127_s1, [#allocation4]  }
  0x23   :  { %88 = dma.done.wait [#allocation4], 256  }
  0x24   :  { %89 = vsyncadd [#allocation4], 4294967040 }
  0x25   :  { %38 = vsyncpa [#allocation3], 1 }
  0x26   :  { %39 = vsyncpa [#allocation4], 1 }

</bundles_post_ra>
